<compile_context>
chip_gen: v7x
topology: tpu7x:2x2x1
jax: 0.10.0
libtpu: 0.0.40
codegen_flags: <defaults>
</compile_context>

<pallas_src>
import functools
import math

import jax
import jax.numpy as jnp
from jax.experimental import pallas as pl
from jax.experimental.pallas import tpu as pltpu


def _posenc_kernel(x_ref, pe_ref, o_ref, *, scale):
    # x_ref/o_ref: (batch_tile, seq_tile, dim); pe_ref: (seq_tile, dim) or (1, dim).
    # pe broadcasts over the leading (and, for the step path, the seq) axis.
    o_ref[...] = (x_ref[...] * scale + pe_ref[...]).astype(o_ref.dtype)


def make_positional_encoding_table(max_len, dim, dtype=jnp.float32):
    """Exact replica of the PyTorch buffer construction (requires even dim)."""
    position = jnp.arange(max_len, dtype=jnp.float32)[:, None]                 # (max_len, 1)
    div_term = jnp.exp(
        jnp.arange(0, dim, 2, dtype=jnp.float32) * -(math.log(10000.0) / dim)  # (dim//2,)
    )
    angles = position * div_term                                               # (max_len, dim//2)
    pe = jnp.zeros((max_len, dim), dtype=jnp.float32)
    pe = pe.at[:, 0::2].set(jnp.sin(angles))
    pe = pe.at[:, 1::2].set(jnp.cos(angles))
    return pe.astype(dtype)


_SEQ_TILE_CANDIDATES = (512, 384, 256, 128, 64, 32, 16, 8)
# Conservative resident-block budget: fits v7x's 64 MiB physical VMEM with headroom,
# well under v5e/v6e's 128 MiB once vmem_limit_bytes is raised.
_VMEM_BLOCK_BUDGET = 24 * 1024 * 1024


def _pick_tiles(batch, seq, dim, emb_bytes, pe_bytes):
    """Pick (batch_tile, seq_tile) so double-buffered blocks fit the VMEM budget."""

    def footprint(bt, st):
        # emb in (x2 buffers) + out (x2 buffers) + pe (x2 buffers)
        return st * (4 * bt * dim * emb_bytes + 2 * dim * pe_bytes)

    for bt in ((batch, 1) if batch > 1 else (1,)):
        # Small sequences: take the whole seq extent in one block (always layout-legal).
        if seq <= 512 and footprint(bt, seq) <= _VMEM_BLOCK_BUDGET:
            return bt, seq
        # Otherwise use a fixed, large, 8-aligned tile; ragged last block is masked.
        for st in _SEQ_TILE_CANDIDATES:
            if st <= seq and footprint(bt, st) <= _VMEM_BLOCK_BUDGET:
                return bt, st
    # Pathological (enormous dim): smallest legal tile; vmem_limit is raised to match.
    return 1, (seq if seq < 8 else 8)


def positional_encoding(emb, pe, *, step=None):
    """emb: (batch, seq, dim). pe: (max_len, dim) f32 table. Returns emb-shaped array."""
    batch, seq, dim = emb.shape
    scale = math.sqrt(dim)  # sqrt of the *model* dim, independent of lane padding

    # bf16 inputs: compute in bf16 (native on v6e/v7x VPUs); otherwise stay in f32.
    compute_dtype = jnp.bfloat16 if emb.dtype == jnp.bfloat16 else jnp.float32

    if step is None:
        pe_used = pe[:seq].astype(compute_dtype)              # (seq, dim)
    else:
        # Single row; broadcast happens inside the kernel (no HBM materialization).
        pe_used = pe[step][None, :].astype(compute_dtype)      # (1, dim)

    # Lane-dense guard: pad dim to a multiple of 128 (avoids masked partial stores).
    x = emb
    pad = (-dim) % 128
    if pad:
        x = jnp.pad(x, ((0, 0), (0, 0), (0, pad)))
        pe_used = jnp.pad(pe_used, ((0, 0), (0, pad)))
    dim_p = dim + pad

    emb_bytes = jnp.dtype(x.dtype).itemsize
    pe_bytes = jnp.dtype(pe_used.dtype).itemsize
    batch_tile, seq_tile = _pick_tiles(batch, seq, dim_p, emb_bytes, pe_bytes)

    grid = (pl.cdiv(seq, seq_tile), pl.cdiv(batch, batch_tile))

    if step is None:
        # pe indexed only by the seq-tile axis -> stays resident across the batch loop.
        pe_spec = pl.BlockSpec((seq_tile, dim_p), lambda s, b: (s, 0))
        pe_read_bytes = seq * dim_p * pe_bytes
    else:
        pe_spec = pl.BlockSpec((1, dim_p), lambda s, b: (0, 0))
        pe_read_bytes = dim_p * pe_bytes

    footprint = seq_tile * (4 * batch_tile * dim_p * emb_bytes + 2 * dim_p * pe_bytes)
    vmem_limit = max(32 * 1024 * 1024, footprint + 2 * 1024 * 1024)

    cost = pl.CostEstimate(
        flops=2 * batch * seq * dim_p,        # one mul + one add per element
        transcendentals=0,                    # sin/cos precomputed outside the kernel
        bytes_accessed=2 * batch * seq * dim_p * emb_bytes + pe_read_bytes,
    )

    out = pl.pallas_call(
        functools.partial(_posenc_kernel, scale=scale),
        out_shape=jax.ShapeDtypeStruct(x.shape, emb.dtype),
        grid_spec=pltpu.PrefetchScalarGridSpec(
            num_scalar_prefetch=0,
            grid=grid,
            in_specs=[
                pl.BlockSpec((batch_tile, seq_tile, dim_p), lambda s, b: (b, s, 0)),
                pe_spec,
            ],
            out_specs=pl.BlockSpec((batch_tile, seq_tile, dim_p), lambda s, b: (b, s, 0)),
        ),
        compiler_params=pltpu.CompilerParams(
            dimension_semantics=("parallel", "parallel"),
            vmem_limit_bytes=vmem_limit,
        ),
        cost_estimate=cost,
        input_output_aliases={0: 0},  # write over the (dead) embedding buffer
    )(x, pe_used)

    if pad:
        out = out[..., :dim]
    return out
    # TODO(synk): nn.Dropout is identity in eval mode and is therefore omitted.


def _reference(emb, pe, *, step=None):
    dim = emb.shape[-1]
    seq = emb.shape[1]
    x = emb.astype(jnp.float32) * math.sqrt(dim)
    if step is None:
        x = x + pe[:seq][None, :, :]
    else:
        x = x + pe[step][None, None, :]
    return x.astype(emb.dtype)


if __name__ == "__main__":
    # Small shapes consistent with the module: (batch, seq, dim) embeddings,
    # dim a multiple of 128 so the last axis is lane-dense.
    batch, seq, dim, max_len = 2, 16, 128, 64

    key = jax.random.PRNGKey(0)
    emb = jax.random.normal(key, (batch, seq, dim), dtype=jnp.float32)
    pe = make_positional_encoding_table(max_len, dim)

    # References computed up front (kernel may alias/donate its input buffer).
    ref = _reference(emb, pe)
    ref_step = _reference(emb, pe, step=3)

    # Main (step=None) path.
    out = jax.block_until_ready(positional_encoding(emb, pe))
    assert jnp.allclose(out, ref, atol=1e-5, rtol=1e-5), "mismatch vs reference (step=None)"

    # step path (emb + pe[step] broadcast over seq).
    out_step = jax.block_until_ready(positional_encoding(emb, pe, step=3))
    assert jnp.allclose(out_step, ref_step, atol=1e-5, rtol=1e-5), "mismatch vs reference (step)"

    print("KERNEL_OK")
</pallas_src>

<mosaic_0001>
module attributes {stable_mosaic.version = 11 : i64} {
  func.func @_posenc_kernel(%arg0: i32, %arg1: i32, %arg2: memref<2x16x128xf32, #tpu.memory_space<vmem>>, %arg3: memref<16x128xf32, #tpu.memory_space<vmem>>, %arg4: memref<2x16x128xf32, #tpu.memory_space<vmem>>) attributes {dimension_semantics = [#tpu.dimension_semantics<parallel>, #tpu.dimension_semantics<parallel>], iteration_bounds = array<i64: 1, 1>, scalar_prefetch = 0 : i64, scratch_operands = 0 : i64, tpu.core_type = #tpu.core_type<tc>, window_params = [{transform_indices = @transform_0, window_bounds = array<i64: 2, 16, 128>}, {transform_indices = @transform_1, window_bounds = array<i64: 16, 128>}, {transform_indices = @transform_2, window_bounds = array<i64: 2, 16, 128>}]} {
    %c0 = arith.constant 0 : index
    %c0_0 = arith.constant 0 : index
    %c0_1 = arith.constant 0 : index
    %0 = vector.load %arg2[%c0, %c0_0, %c0_1] : memref<2x16x128xf32, #tpu.memory_space<vmem>>, vector<2x16x128xf32>
    %cst = arith.constant 11.3137083 : f32
    %1 = vector.broadcast %cst : f32 to vector<2x16x128xf32>
    %2 = arith.mulf %0, %1 : vector<2x16x128xf32>
    %c0_2 = arith.constant 0 : index
    %c0_3 = arith.constant 0 : index
    %3 = vector.load %arg3[%c0_2, %c0_3] : memref<16x128xf32, #tpu.memory_space<vmem>>, vector<16x128xf32>
    %4 = vector.shape_cast %3 : vector<16x128xf32> to vector<1x16x128xf32>
    %5 = vector.broadcast %4 : vector<1x16x128xf32> to vector<2x16x128xf32>
    %6 = arith.addf %2, %5 : vector<2x16x128xf32>
    %c0_4 = arith.constant 0 : index
    %c0_5 = arith.constant 0 : index
    %c0_6 = arith.constant 0 : index
    %7 = vector.load %arg4[%c0_4, %c0_5, %c0_6] : memref<2x16x128xf32, #tpu.memory_space<vmem>>, vector<2x16x128xf32>
    tpu.vector_store %arg4[%c0_4, %c0_5, %c0_6], %6 {strides = array<i32>} : memref<2x16x128xf32, #tpu.memory_space<vmem>>, vector<2x16x128xf32>,
    return
  }
  func.func @transform_0(%arg0: i32, %arg1: i32) -> (i32, i32, i32) {
    %c0_i32 = arith.constant 0 : i32
    %c0_i32_0 = arith.constant 0 : i32
    return %arg1, %arg0, %c0_i32 : i32, i32, i32
  }
  func.func @transform_1(%arg0: i32, %arg1: i32) -> (i32, i32) {
    %c0_i32 = arith.constant 0 : i32
    %c0_i32_0 = arith.constant 0 : i32
    return %arg0, %c0_i32 : i32, i32
  }
  func.func @transform_2(%arg0: i32, %arg1: i32) -> (i32, i32, i32) {
    %c0_i32 = arith.constant 0 : i32
    %c0_i32_0 = arith.constant 0 : i32
    return %arg1, %arg0, %c0_i32 : i32, i32, i32
  }
}

</mosaic_0001>

<bundles_post_ra>
// kernel: tpu_custom_call.1
= control target key start
LH: loop header
LB: loop body
LE: loop exit
PB: predicated region body
PF: predicated region fallthrough
CT: control target
= control target key end

     0   :  { %7 = vsyncpa [#allocation3], 0  ;;  %s168_s0 = inlined_call_operand.hbm [shape: f32[2,16,128], index: 0, kind: input, shape index: {}, may-alias: {0,2}]   ;;  %s169_s1 = inlined_call_operand.vmem [shape: f32[16,128], index: 1, kind: input, shape index: {}]   ;;  %s170_s2 = inlined_call_operand.hbm [shape: f32[2,16,128], index: 2, kind: output, shape index: {}, may-alias: {0,2}]  }
   0x1   :  { %8 = vsyncpa [#allocation4], 0  ;;  %s113_s9 = smov [#allocation2]   ;;  %s65_s13 = scalar_lea.hbm %s168_s0, 512 }
   0x2   :  { %s14_s10 = sshll.u32 %s113_s9, 4  ;;  %p66_p0 = scmp.ne.s32.totalorder %s168_s0, %s65_s13  ;;  %s15_s10 = int_to_ptr.vmem [resolvable:$true] %s14_s10 }
   0x3   :  { %p69_p1 = scmp.lt.u32.totalorder %s65_s13, %s168_s0 }
   0x5   :  { %p71_p2 = pnand %p69_p1, %p66_p0 }
   0x7   :  { %74 = shalt.err (!%p71_p2)
}
   0x8   :  { %s75_s18 = scalar_lea.vmem %s15_s10, 512  ;;  %p80_p4 = scmp.lt.s32.totalorder %s15_s10, %s15_s10 }
   0x9   :  { %p76_p3 = scmp.ne.s32.totalorder %s15_s10, %s75_s18  ;;  %p81_p5 = scmp.lt.s32.totalorder %s75_s18, %s75_s18 }
   0xb   :  { %p82_p6 = por %p81_p5, %p80_p4 }
   0xd   :  { %p83_p7 = pnand %p82_p6, %p76_p3 }
   0xf   :  { %86 = shalt.err (!%p83_p7)
}
  0x10   :  { %s114_s19 = smov 128   ;;  %s115_s20 = smov 8  }
  0x11   :  { %20 = dma.hbm_to_vmem [thread:$0]  %s168_s0, 512, %s15_s10, [#allocation3], %s114_s19, %s114_s19, %s115_s20  }
  0x12   :  { %109 = dma.done.wait [#allocation3], 512  }
  0x13   :  { %110 = vsyncadd [#allocation3], 4294966784  ;;  %v26_v0 = vld [vmem:[#allocation2] sm:$0xff]  ;;  %v27_v2 = vld [vmem:[#allocation2 + $0x8] sm:$0xff]  ;;  %s116_s27 = smov [#allocation5]  }
  0x14   :  { %v34_v1 = vld [vmem:[%s169_s1] sm:$0xff]  ;;  %v30_v3 = vmul.f32 11.313708, %v26_v0  ;;  %v31_v4 = vmul.f32 11.313708, %v27_v2  ;;  %v35_v5 = vld [vmem:[%s169_s1 + $0x8] sm:$0xff] }
  0x15   :  { %v28_v6 = vld [vmem:[#allocation2 + $0x10] sm:$0xff]  ;;  %v29_v8 = vld [vmem:[#allocation2 + $0x18] sm:$0xff]  ;;  %s49_s28 = sshll.u32 %s116_s27, 4  ;;  %s50_s28 = int_to_ptr.vmem [resolvable:$true] %s49_s28 }
  0x16   :  { %v32_v7 = vmul.f32 11.313708, %v28_v6  ;;  %v36_v9 = vadd.f32 %v34_v1, %v30_v3  ;;  %v37_v10 = vadd.f32 %v35_v5, %v31_v4  ;;  %v33_v11 = vmul.f32 11.313708, %v29_v8  ;;  %s87_s0 = scalar_lea.vmem %s50_s28, 512  ;;  %p92_p9 = scmp.lt.s32.totalorder %s50_s28, %s50_s28 }
  0x17   :  { %p88_p8 = scmp.ne.s32.totalorder %s50_s28, %s87_s0  ;;  %p93_p10 = scmp.lt.s32.totalorder %s87_s0, %s87_s0 }
  0x18   :  { %v38_v12 = vadd.f32 %v34_v1, %v32_v7  ;;  %40 = vst [vmem:[#allocation5] sm:$0xff] %v36_v9  ;;  %41 = vst [vmem:[#allocation5 + $0x8] sm:$0xff] %v37_v10  ;;  %v39_v13 = vadd.f32 %v35_v5, %v33_v11 }
  0x19   :  { %p94_p11 = por %p93_p10, %p92_p9 }
  0x1a   :  { %42 = vst [vmem:[#allocation5 + $0x10] sm:$0xff] %v38_v12  ;;  %43 = vst [vmem:[#allocation5 + $0x18] sm:$0xff] %v39_v13 }
  0x1b   :  { %p95_p12 = pnand %p94_p11, %p88_p8 }
  0x1d   :  { %98 = shalt.err (!%p95_p12)
}
  0x1e   :  { %s99_s30 = scalar_lea.hbm %s170_s2, 512 }
  0x1f   :  { %p100_p13 = scmp.ne.s32.totalorder %s170_s2, %s99_s30  ;;  %p103_p0 = scmp.lt.u32.totalorder %s99_s30, %s170_s2 }
  0x21   :  { %p105_p1 = pnand %p103_p0, %p100_p13 }
  0x23   :  { %108 = shalt.err (!%p105_p1)
}
  0x24   :  { %55 = dma.vmem_to_hbm [thread:$0]  %s50_s28, 512, %s170_s2, [#allocation4], %s114_s19, %s114_s19, %s115_s20  }
  0x25   :  { %111 = dma.done.wait [#allocation4], 512  }
  0x26   :  { %112 = vsyncadd [#allocation4], 4294966784 }
  0x27   :  { %59 = vsyncpa [#allocation3], 1 }
  0x28   :  { %60 = vsyncpa [#allocation4], 1 }

</bundles_post_ra>
